<compile_context>
chip_gen: v7x
topology: tpu7x:2x2x1
jax: 0.10.0
libtpu: 0.0.40
codegen_flags: <defaults>
</compile_context>

<pallas_src>
import jax
import jax.numpy as jnp
from jax.experimental import pallas as pl
from jax.experimental.pallas import tpu as pltpu


def _round_up(n, m):
    return -(-n // m) * m


# ----------------------------------------------------------------------------
# Parameter packing: one lane-dense (P, 128) f32 slab + static offset metadata
# ----------------------------------------------------------------------------
def _pack_params(params, K, num_inputs):
    blobs, meta = [], []
    off = 0

    def add(arr2d):
        nonlocal off
        o = off
        blobs.append((o, arr2d))
        off += _round_up(arr2d.shape[0], 8)  # keep every row offset 8-aligned
        return o

    cin = num_inputs
    for i, blk in enumerate(params):
        cout = blk["w1"].shape[2]
        cr = blk["se_w1"].shape[0]
        m = {
            "dilation": 2 ** i, "cin": cin, "cout": cout, "cr": cr,
            "trailing_relu": i <= 1,
            # conv weights stacked (K*Cin, Cout): rows [k*Cin:(k+1)*Cin] = w[k]
            "w1": add(blk["w1"].reshape(K * cin, cout)),
            "b1": add(blk["b1"].reshape(1, cout)),
            "w2": add(blk["w2"].reshape(K * cout, cout)),
            "b2": add(blk["b2"].reshape(1, cout)),
            "se1": add(blk["se_w1"]),
            "se2": add(blk["se_w2"]),
            "has_down": blk["wd"] is not None,
        }
        if m["has_down"]:
            m["wd"] = add(blk["wd"].reshape(cin, cout))
            m["bd"] = add(blk["bd"].reshape(1, cout))
        meta.append(m)
        cin = cout

    slab = jnp.zeros((max(_round_up(off, 8), 8), 128), jnp.float32)
    for o, arr in blobs:
        r, c = arr.shape
        slab = slab.at[o:o + r, :c].set(arr.astype(jnp.float32))
    return slab, tuple(meta)


# ----------------------------------------------------------------------------
# Fused Pallas kernel (whole TCNSE forward, one batch element per grid step)
# ----------------------------------------------------------------------------
def _make_fused_kernel(meta, *, K):
    def kernel(x_ref, slab_ref, o_ref):
        a = x_ref[0].astype(jnp.float32)          # (L, C_in)
        L = a.shape[0]

        for m in meta:
            d = m["dilation"]
            cin, cout, cr = m["cin"], m["cout"], m["cr"]

            def causal_conv(h, w_off, b_off, hcin, apply_relu,
                            d=d, cout=cout, L=L):
                # Causal windows built in-register: prepend (K-1)*d zero rows,
                # take K dilation-shifted L-row slices, concat along lanes,
                # then ONE im2col matmul on the MXU.
                pad = (K - 1) * d
                hp = jnp.concatenate(
                    [jnp.zeros((pad, hcin), jnp.float32), h], axis=0)
                wins = [hp[k * d:k * d + L, :] for k in range(K)]
                col = jnp.concatenate(wins, axis=1)             # (L, K*hcin)
                w = slab_ref[w_off:w_off + K * hcin, 0:cout]    # (K*hcin, cout)
                b = slab_ref[b_off:b_off + 1, 0:cout]           # (1, cout)
                y = jnp.dot(col, w, preferred_element_type=jnp.float32) + b
                return jnp.maximum(y, 0.0) if apply_relu else y

            # conv1 -> chomp -> ReLU -> (dropout=id) -> conv2 -> chomp -> ReLU
            h = causal_conv(a, m["w1"], m["b1"], cin, True)
            h = causal_conv(h, m["w2"], m["b2"], cout, True)

            # residual branch (1x1 conv only when channel count changes)
            if m["has_down"]:
                wd = slab_ref[m["wd"]:m["wd"] + cin, 0:cout]
                bd = slab_ref[m["bd"]:m["bd"] + 1, 0:cout]
                res = jnp.dot(a, wd, preferred_element_type=jnp.float32) + bd
            else:
                res = a

            # SE gating on VPU/XLU/EUP (Cr is tiny -> no MXU push/pop):
            #   pooled @ W1.T -> ReLU -> @ W2 -> sigmoid, W1/W2 stored (Cr, C)
            sw1 = slab_ref[m["se1"]:m["se1"] + cr, 0:cout]
            sw2 = slab_ref[m["se2"]:m["se2"] + cr, 0:cout]
            pooled = jnp.mean(h, axis=0, keepdims=True)                       # (1, C)
            z = jnp.maximum(
                jnp.sum(sw1 * pooled, axis=1, keepdims=True), 0.0)            # (Cr, 1)
            s = jax.nn.sigmoid(jnp.sum(z * sw2, axis=0, keepdims=True))       # (1, C)

            a = h * s + res
            if m["trailing_relu"]:                # network-level ReLU (blocks i <= 1)
                a = jnp.maximum(a, 0.0)

        o_ref[0] = a.astype(o_ref.dtype)          # single HBM write of the result

    return kernel


# ----------------------------------------------------------------------------
# Wrapper (pallas_call plumbing)
# ----------------------------------------------------------------------------
def tcnse_forward(x, params):
    """x: (N, L, C_in); params: list of block dicts. Returns (N, L, C_last)."""
    N, L, cin0 = x.shape
    K = params[0]["w1"].shape[0]
    cout_last = params[-1]["w1"].shape[2]

    slab, meta = _pack_params(params, K, cin0)
    kernel = _make_fused_kernel(meta, K=K)

    return pl.pallas_call(
        kernel,
        out_shape=jax.ShapeDtypeStruct((N, L, cout_last), x.dtype),
        grid=(N,),
        in_specs=[
            pl.BlockSpec((1, L, cin0), lambda n: (n, 0, 0)),
            # single packed parameter slab, constant block index -> DMA'd once
            pl.BlockSpec(slab.shape, lambda n: (0, 0)),
        ],
        out_specs=pl.BlockSpec((1, L, cout_last), lambda n: (n, 0, 0)),
        compiler_params=pltpu.CompilerParams(
            dimension_semantics=("parallel",)),
    )(x, slab)


# ----------------------------------------------------------------------------
# Parameter init (matches init_weights(): conv weights ~ N(0, 0.01); weight_norm
# is identity at init).  SE Linear weights stored (Cr, C) = PyTorch layout.
# ----------------------------------------------------------------------------
def init_tcnse_params(key, num_inputs, num_channels, kernel_size, reduction_ratio):
    params = []
    cin = num_inputs
    for i, cout in enumerate(num_channels):
        keys = jax.random.split(jax.random.fold_in(key, i), 8)
        cr = cout // reduction_ratio
        blk = {
            "w1": 0.01 * jax.random.normal(keys[0], (kernel_size, cin, cout), jnp.float32),
            "b1": 0.01 * jax.random.normal(keys[1], (cout,), jnp.float32),
            "w2": 0.01 * jax.random.normal(keys[2], (kernel_size, cout, cout), jnp.float32),
            "b2": 0.01 * jax.random.normal(keys[3], (cout,), jnp.float32),
            # SE linear layers (bias=False), both stored as (Cr, C)
            "se_w1": 0.1 * jax.random.normal(keys[4], (cr, cout), jnp.float32),
            "se_w2": 0.1 * jax.random.normal(keys[5], (cr, cout), jnp.float32),
            "wd": None,
            "bd": None,
        }
        if cin != cout:
            blk["wd"] = 0.01 * jax.random.normal(keys[6], (1, cin, cout), jnp.float32)
            blk["bd"] = 0.01 * jax.random.normal(keys[7], (cout,), jnp.float32)
        params.append(blk)
        cin = cout
    return params


# ----------------------------------------------------------------------------
# Pure-JAX reference (for correctness check)
# ----------------------------------------------------------------------------
def _ref_conv(x, w, b, dilation, relu):
    N, L, Cin = x.shape
    K = w.shape[0]
    pad = (K - 1) * dilation
    xp = jnp.pad(x, ((0, 0), (pad, 0), (0, 0)))
    y = sum(jnp.einsum("nlc,cd->nld", xp[:, k * dilation:k * dilation + L, :], w[k])
            for k in range(K)) + b
    return jnp.maximum(y, 0.0) if relu else y


def _ref_forward(x, params):
    out = x
    for i, blk in enumerate(params):
        d = 2 ** i
        h = _ref_conv(out, blk["w1"], blk["b1"], d, True)
        h = _ref_conv(h, blk["w2"], blk["b2"], d, True)
        res = out if blk["wd"] is None else _ref_conv(out, blk["wd"], blk["bd"], 1, False)
        pooled = jnp.mean(h, axis=1)                                          # (N, C)
        s = jax.nn.sigmoid(jnp.maximum(pooled @ blk["se_w1"].T, 0.0) @ blk["se_w2"])
        y = h * s[:, None, :] + res
        out = jnp.maximum(y, 0.0) if i <= 1 else y
    return out


# ----------------------------------------------------------------------------
if __name__ == "__main__":
    key = jax.random.PRNGKey(0)

    # Small shapes: batch=2, num_inputs=8, seq_len=16, channels=[32, 32, 32]
    N, C_IN, L = 2, 8, 16
    NUM_CHANNELS = [32, 32, 32]
    KSIZE, RED = 3, 16

    k_x, k_p = jax.random.split(key)
    x_ncl = jax.random.normal(k_x, (N, C_IN, L), jnp.float32)   # PyTorch NCL convention
    x_nlc = jnp.transpose(x_ncl, (0, 2, 1))                     # kernel layout (N, L, C)

    params = init_tcnse_params(k_p, C_IN, NUM_CHANNELS, KSIZE, RED)

    y = jax.block_until_ready(tcnse_forward(x_nlc, params))
    y_ref = jax.block_until_ready(_ref_forward(x_nlc, params))

    assert y.shape == (N, L, NUM_CHANNELS[-1])
    assert jnp.allclose(y, y_ref, atol=1e-5, rtol=1e-5), "Pallas output mismatch vs reference"

    print("KERNEL_OK")
</pallas_src>

<mosaic_0001>
module attributes {stable_mosaic.version = 11 : i64} {
  func.func @kernel(%arg0: i32, %arg1: memref<1x16x8xf32, #tpu.memory_space<vmem>>, %arg2: memref<616x128xf32, #tpu.memory_space<vmem>>, %arg3: memref<1x16x32xf32, #tpu.memory_space<vmem>>) attributes {dimension_semantics = [#tpu.dimension_semantics<parallel>], iteration_bounds = array<i64: 2>, scalar_prefetch = 0 : i64, scratch_operands = 0 : i64, tpu.core_type = #tpu.core_type<tc>, window_params = [{transform_indices = @transform_0, window_bounds = array<i64: 1, 16, 8>}, {pipeline_mode = #tpu.pipeline_mode<synchronous>, transform_indices = @transform_1, window_bounds = array<i64: 616, 128>}, {transform_indices = @transform_2, window_bounds = array<i64: 1, 16, 32>}]} {
    %c0 = arith.constant 0 : index
    %c0_0 = arith.constant 0 : index
    %c0_1 = arith.constant 0 : index
    %0 = vector.load %arg1[%c0, %c0_0, %c0_1] : memref<1x16x8xf32, #tpu.memory_space<vmem>>, vector<1x16x8xf32>
    %1 = vector.shape_cast %0 : vector<1x16x8xf32> to vector<16x8xf32>
    %cst = arith.constant 0.000000e+00 : f32
    %2 = vector.broadcast %cst : f32 to vector<2x8xf32>
    %3 = tpu.concatenate %2, %1 in 0 : vector<2x8xf32>, vector<16x8xf32> -> vector<18x8xf32>
    %4 = vector.extract_strided_slice %3 {offsets = [0, 0], sizes = [16, 8], strides = [1, 1]} : vector<18x8xf32> to vector<16x8xf32>
    %5 = vector.extract_strided_slice %3 {offsets = [1, 0], sizes = [16, 8], strides = [1, 1]} : vector<18x8xf32> to vector<16x8xf32>
    %6 = vector.extract_strided_slice %3 {offsets = [2, 0], sizes = [16, 8], strides = [1, 1]} : vector<18x8xf32> to vector<16x8xf32>
    %7 = tpu.concatenate %4, %5, %6 in 1 : vector<16x8xf32>, vector<16x8xf32>, vector<16x8xf32> -> vector<16x24xf32>
    %c0_2 = arith.constant 0 : index
    %c0_3 = arith.constant 0 : index
    %8 = vector.load %arg2[%c0_2, %c0_3] : memref<616x128xf32, #tpu.memory_space<vmem>>, vector<24x32xf32>
    %c24 = arith.constant 24 : index
    %c0_4 = arith.constant 0 : index
    %9 = vector.load %arg2[%c24, %c0_4] : memref<616x128xf32, #tpu.memory_space<vmem>>, vector<1x32xf32>
    %cst_5 = arith.constant dense<0.000000e+00> : vector<16x32xf32>
    %10 = tpu.matmul %7, %8, %cst_5 {dimension_numbers = #tpu.dot_dimension_numbers<[1], [0], [0], [1], [0, 0, 1, 1], [], []>} : vector<16x24xf32>, vector<24x32xf32>, vector<16x32xf32> -> vector<16x32xf32>
    %11 = vector.broadcast %9 : vector<1x32xf32> to vector<16x32xf32>
    %12 = arith.addf %10, %11 : vector<16x32xf32>
    %cst_6 = arith.constant 0.000000e+00 : f32
    %13 = vector.broadcast %cst_6 : f32 to vector<16x32xf32>
    %14 = arith.maximumf %12, %13 : vector<16x32xf32>
    %cst_7 = arith.constant 0.000000e+00 : f32
    %15 = vector.broadcast %cst_7 : f32 to vector<2x32xf32>
    %16 = tpu.concatenate %15, %14 in 0 : vector<2x32xf32>, vector<16x32xf32> -> vector<18x32xf32>
    %17 = vector.extract_strided_slice %16 {offsets = [0, 0], sizes = [16, 32], strides = [1, 1]} : vector<18x32xf32> to vector<16x32xf32>
    %18 = vector.extract_strided_slice %16 {offsets = [1, 0], sizes = [16, 32], strides = [1, 1]} : vector<18x32xf32> to vector<16x32xf32>
    %19 = vector.extract_strided_slice %16 {offsets = [2, 0], sizes = [16, 32], strides = [1, 1]} : vector<18x32xf32> to vector<16x32xf32>
    %20 = tpu.concatenate %17, %18, %19 in 1 : vector<16x32xf32>, vector<16x32xf32>, vector<16x32xf32> -> vector<16x96xf32>
    %c32 = arith.constant 32 : index
    %c0_8 = arith.constant 0 : index
    %21 = vector.load %arg2[%c32, %c0_8] : memref<616x128xf32, #tpu.memory_space<vmem>>, vector<96x32xf32>
    %c128 = arith.constant 128 : index
    %c0_9 = arith.constant 0 : index
    %22 = vector.load %arg2[%c128, %c0_9] : memref<616x128xf32, #tpu.memory_space<vmem>>, vector<1x32xf32>
    %cst_10 = arith.constant dense<0.000000e+00> : vector<16x32xf32>
    %23 = tpu.matmul %20, %21, %cst_10 {dimension_numbers = #tpu.dot_dimension_numbers<[1], [0], [0], [1], [0, 0, 1, 1], [], []>} : vector<16x96xf32>, vector<96x32xf32>, vector<16x32xf32> -> vector<16x32xf32>
    %24 = vector.broadcast %22 : vector<1x32xf32> to vector<16x32xf32>
    %25 = arith.addf %23, %24 : vector<16x32xf32>
    %cst_11 = arith.constant 0.000000e+00 : f32
    %26 = vector.broadcast %cst_11 : f32 to vector<16x32xf32>
    %27 = arith.maximumf %25, %26 : vector<16x32xf32>
    %c152 = arith.constant 152 : index
    %c0_12 = arith.constant 0 : index
    %28 = vector.load %arg2[%c152, %c0_12] : memref<616x128xf32, #tpu.memory_space<vmem>>, vector<8x32xf32>
    %c160 = arith.constant 160 : index
    %c0_13 = arith.constant 0 : index
    %29 = vector.load %arg2[%c160, %c0_13] : memref<616x128xf32, #tpu.memory_space<vmem>>, vector<1x32xf32>
    %cst_14 = arith.constant dense<0.000000e+00> : vector<16x32xf32>
    %30 = tpu.matmul %1, %28, %cst_14 {dimension_numbers = #tpu.dot_dimension_numbers<[1], [0], [0], [1], [0, 0, 1, 1], [], []>} : vector<16x8xf32>, vector<8x32xf32>, vector<16x32xf32> -> vector<16x32xf32>
    %31 = vector.broadcast %29 : vector<1x32xf32> to vector<16x32xf32>
    %32 = arith.addf %30, %31 : vector<16x32xf32>
    %c136 = arith.constant 136 : index
    %c0_15 = arith.constant 0 : index
    %33 = vector.load %arg2[%c136, %c0_15] : memref<616x128xf32, #tpu.memory_space<vmem>>, vector<2x32xf32>
    %c144 = arith.constant 144 : index
    %c0_16 = arith.constant 0 : index
    %34 = vector.load %arg2[%c144, %c0_16] : memref<616x128xf32, #tpu.memory_space<vmem>>, vector<2x32xf32>
    %cst_17 = arith.constant dense<0.000000e+00> : vector<32xf32>
    %35 = vector.multi_reduction <add>, %27, %cst_17 [0] : vector<16x32xf32> to vector<32xf32>
    %36 = vector.shape_cast %35 : vector<32xf32> to vector<1x32xf32>
    %cst_18 = arith.constant 1.600000e+01 : f32
    %37 = vector.broadcast %cst_18 : f32 to vector<1x32xf32>
    %38 = arith.divf %36, %37 : vector<1x32xf32>
    %39 = vector.broadcast %38 : vector<1x32xf32> to vector<2x32xf32>
    %40 = arith.mulf %33, %39 : vector<2x32xf32>
    %cst_19 = arith.constant dense<0.000000e+00> : vector<2xf32>
    %41 = vector.multi_reduction <add>, %40, %cst_19 [1] : vector<2x32xf32> to vector<2xf32>
    %42 = vector.shape_cast %41 : vector<2xf32> to vector<2x1xf32>
    %cst_20 = arith.constant 0.000000e+00 : f32
    %43 = vector.broadcast %cst_20 : f32 to vector<2x1xf32>
    %44 = arith.maximumf %42, %43 : vector<2x1xf32>
    %45 = vector.broadcast %44 : vector<2x1xf32> to vector<2x32xf32>
    %46 = arith.mulf %45, %34 : vector<2x32xf32>
    %cst_21 = arith.constant dense<0.000000e+00> : vector<32xf32>
    %47 = vector.multi_reduction <add>, %46, %cst_21 [0] : vector<2x32xf32> to vector<32xf32>
    %48 = vector.shape_cast %47 : vector<32xf32> to vector<1x32xf32>
    %49 = arith.negf %48 : vector<1x32xf32>
    %50 = math.exp %49 : vector<1x32xf32>
    %cst_22 = arith.constant 1.000000e+00 : f32
    %51 = vector.broadcast %cst_22 : f32 to vector<1x32xf32>
    %52 = arith.addf %51, %50 : vector<1x32xf32>
    %53 = arith.divf %51, %52 : vector<1x32xf32>
    %54 = vector.broadcast %53 : vector<1x32xf32> to vector<16x32xf32>
    %55 = arith.mulf %27, %54 : vector<16x32xf32>
    %56 = arith.addf %55, %32 : vector<16x32xf32>
    %cst_23 = arith.constant 0.000000e+00 : f32
    %57 = vector.broadcast %cst_23 : f32 to vector<16x32xf32>
    %58 = arith.maximumf %56, %57 : vector<16x32xf32>
    %cst_24 = arith.constant 0.000000e+00 : f32
    %59 = vector.broadcast %cst_24 : f32 to vector<4x32xf32>
    %60 = tpu.concatenate %59, %58 in 0 : vector<4x32xf32>, vector<16x32xf32> -> vector<20x32xf32>
    %61 = vector.extract_strided_slice %60 {offsets = [0, 0], sizes = [16, 32], strides = [1, 1]} : vector<20x32xf32> to vector<16x32xf32>
    %62 = vector.extract_strided_slice %60 {offsets = [2, 0], sizes = [16, 32], strides = [1, 1]} : vector<20x32xf32> to vector<16x32xf32>
    %63 = vector.extract_strided_slice %60 {offsets = [4, 0], sizes = [16, 32], strides = [1, 1]} : vector<20x32xf32> to vector<16x32xf32>
    %64 = tpu.concatenate %61, %62, %63 in 1 : vector<16x32xf32>, vector<16x32xf32>, vector<16x32xf32> -> vector<16x96xf32>
    %c168 = arith.constant 168 : index
    %c0_25 = arith.constant 0 : index
    %65 = vector.load %arg2[%c168, %c0_25] : memref<616x128xf32, #tpu.memory_space<vmem>>, vector<96x32xf32>
    %c264 = arith.constant 264 : index
    %c0_26 = arith.constant 0 : index
    %66 = vector.load %arg2[%c264, %c0_26] : memref<616x128xf32, #tpu.memory_space<vmem>>, vector<1x32xf32>
    %cst_27 = arith.constant dense<0.000000e+00> : vector<16x32xf32>
    %67 = tpu.matmul %64, %65, %cst_27 {dimension_numbers = #tpu.dot_dimension_numbers<[1], [0], [0], [1], [0, 0, 1, 1], [], []>} : vector<16x96xf32>, vector<96x32xf32>, vector<16x32xf32> -> vector<16x32xf32>
    %68 = vector.broadcast %66 : vector<1x32xf32> to vector<16x32xf32>
    %69 = arith.addf %67, %68 : vector<16x32xf32>
    %cst_28 = arith.constant 0.000000e+00 : f32
    %70 = vector.broadcast %cst_28 : f32 to vector<16x32xf32>
    %71 = arith.maximumf %69, %70 : vector<16x32xf32>
    %cst_29 = arith.constant 0.000000e+00 : f32
    %72 = vector.broadcast %cst_29 : f32 to vector<4x32xf32>
    %73 = tpu.concatenate %72, %71 in 0 : vector<4x32xf32>, vector<16x32xf32> -> vector<20x32xf32>
    %74 = vector.extract_strided_slice %73 {offsets = [0, 0], sizes = [16, 32], strides = [1, 1]} : vector<20x32xf32> to vector<16x32xf32>
    %75 = vector.extract_strided_slice %73 {offsets = [2, 0], sizes = [16, 32], strides = [1, 1]} : vector<20x32xf32> to vector<16x32xf32>
    %76 = vector.extract_strided_slice %73 {offsets = [4, 0], sizes = [16, 32], strides = [1, 1]} : vector<20x32xf32> to vector<16x32xf32>
    %77 = tpu.concatenate %74, %75, %76 in 1 : vector<16x32xf32>, vector<16x32xf32>, vector<16x32xf32> -> vector<16x96xf32>
    %c272 = arith.constant 272 : index
    %c0_30 = arith.constant 0 : index
    %78 = vector.load %arg2[%c272, %c0_30] : memref<616x128xf32, #tpu.memory_space<vmem>>, vector<96x32xf32>
    %c368 = arith.constant 368 : index
    %c0_31 = arith.constant 0 : index
    %79 = vector.load %arg2[%c368, %c0_31] : memref<616x128xf32, #tpu.memory_space<vmem>>, vector<1x32xf32>
    %cst_32 = arith.constant dense<0.000000e+00> : vector<16x32xf32>
    %80 = tpu.matmul %77, %78, %cst_32 {dimension_numbers = #tpu.dot_dimension_numbers<[1], [0], [0], [1], [0, 0, 1, 1], [], []>} : vector<16x96xf32>, vector<96x32xf32>, vector<16x32xf32> -> vector<16x32xf32>
    %81 = vector.broadcast %79 : vector<1x32xf32> to vector<16x32xf32>
    %82 = arith.addf %80, %81 : vector<16x32xf32>
    %cst_33 = arith.constant 0.000000e+00 : f32
    %83 = vector.broadcast %cst_33 : f32 to vector<16x32xf32>
    %84 = arith.maximumf %82, %83 : vector<16x32xf32>
    %c376 = arith.constant 376 : index
    %c0_34 = arith.constant 0 : index
    %85 = vector.load %arg2[%c376, %c0_34] : memref<616x128xf32, #tpu.memory_space<vmem>>, vector<2x32xf32>
    %c384 = arith.constant 384 : index
    %c0_35 = arith.constant 0 : index
    %86 = vector.load %arg2[%c384, %c0_35] : memref<616x128xf32, #tpu.memory_space<vmem>>, vector<2x32xf32>
    %cst_36 = arith.constant dense<0.000000e+00> : vector<32xf32>
    %87 = vector.multi_reduction <add>, %84, %cst_36 [0] : vector<16x32xf32> to vector<32xf32>
    %88 = vector.shape_cast %87 : vector<32xf32> to vector<1x32xf32>
    %cst_37 = arith.constant 1.600000e+01 : f32
    %89 = vector.broadcast %cst_37 : f32 to vector<1x32xf32>
    %90 = arith.divf %88, %89 : vector<1x32xf32>
    %91 = vector.broadcast %90 : vector<1x32xf32> to vector<2x32xf32>
    %92 = arith.mulf %85, %91 : vector<2x32xf32>
    %cst_38 = arith.constant dense<0.000000e+00> : vector<2xf32>
    %93 = vector.multi_reduction <add>, %92, %cst_38 [1] : vector<2x32xf32> to vector<2xf32>
    %94 = vector.shape_cast %93 : vector<2xf32> to vector<2x1xf32>
    %cst_39 = arith.constant 0.000000e+00 : f32
    %95 = vector.broadcast %cst_39 : f32 to vector<2x1xf32>
    %96 = arith.maximumf %94, %95 : vector<2x1xf32>
    %97 = vector.broadcast %96 : vector<2x1xf32> to vector<2x32xf32>
    %98 = arith.mulf %97, %86 : vector<2x32xf32>
    %cst_40 = arith.constant dense<0.000000e+00> : vector<32xf32>
    %99 = vector.multi_reduction <add>, %98, %cst_40 [0] : vector<2x32xf32> to vector<32xf32>
    %100 = vector.shape_cast %99 : vector<32xf32> to vector<1x32xf32>
    %101 = arith.negf %100 : vector<1x32xf32>
    %102 = math.exp %101 : vector<1x32xf32>
    %cst_41 = arith.constant 1.000000e+00 : f32
    %103 = vector.broadcast %cst_41 : f32 to vector<1x32xf32>
    %104 = arith.addf %103, %102 : vector<1x32xf32>
    %105 = arith.divf %103, %104 : vector<1x32xf32>
    %106 = vector.broadcast %105 : vector<1x32xf32> to vector<16x32xf32>
    %107 = arith.mulf %84, %106 : vector<16x32xf32>
    %108 = arith.addf %107, %58 : vector<16x32xf32>
    %cst_42 = arith.constant 0.000000e+00 : f32
    %109 = vector.broadcast %cst_42 : f32 to vector<16x32xf32>
    %110 = arith.maximumf %108, %109 : vector<16x32xf32>
    %cst_43 = arith.constant 0.000000e+00 : f32
    %111 = vector.broadcast %cst_43 : f32 to vector<8x32xf32>
    %112 = tpu.concatenate %111, %110 in 0 : vector<8x32xf32>, vector<16x32xf32> -> vector<24x32xf32>
    %113 = vector.extract_strided_slice %112 {offsets = [0, 0], sizes = [16, 32], strides = [1, 1]} : vector<24x32xf32> to vector<16x32xf32>
    %114 = vector.extract_strided_slice %112 {offsets = [4, 0], sizes = [16, 32], strides = [1, 1]} : vector<24x32xf32> to vector<16x32xf32>
    %115 = vector.extract_strided_slice %112 {offsets = [8, 0], sizes = [16, 32], strides = [1, 1]} : vector<24x32xf32> to vector<16x32xf32>
    %116 = tpu.concatenate %113, %114, %115 in 1 : vector<16x32xf32>, vector<16x32xf32>, vector<16x32xf32> -> vector<16x96xf32>
    %c392 = arith.constant 392 : index
    %c0_44 = arith.constant 0 : index
    %117 = vector.load %arg2[%c392, %c0_44] : memref<616x128xf32, #tpu.memory_space<vmem>>, vector<96x32xf32>
    %c488 = arith.constant 488 : index
    %c0_45 = arith.constant 0 : index
    %118 = vector.load %arg2[%c488, %c0_45] : memref<616x128xf32, #tpu.memory_space<vmem>>, vector<1x32xf32>
    %cst_46 = arith.constant dense<0.000000e+00> : vector<16x32xf32>
    %119 = tpu.matmul %116, %117, %cst_46 {dimension_numbers = #tpu.dot_dimension_numbers<[1], [0], [0], [1], [0, 0, 1, 1], [], []>} : vector<16x96xf32>, vector<96x32xf32>, vector<16x32xf32> -> vector<16x32xf32>
    %120 = vector.broadcast %118 : vector<1x32xf32> to vector<16x32xf32>
    %121 = arith.addf %119, %120 : vector<16x32xf32>
    %cst_47 = arith.constant 0.000000e+00 : f32
    %122 = vector.broadcast %cst_47 : f32 to vector<16x32xf32>
    %123 = arith.maximumf %121, %122 : vector<16x32xf32>
    %cst_48 = arith.constant 0.000000e+00 : f32
    %124 = vector.broadcast %cst_48 : f32 to vector<8x32xf32>
    %125 = tpu.concatenate %124, %123 in 0 : vector<8x32xf32>, vector<16x32xf32> -> vector<24x32xf32>
    %126 = vector.extract_strided_slice %125 {offsets = [0, 0], sizes = [16, 32], strides = [1, 1]} : vector<24x32xf32> to vector<16x32xf32>
    %127 = vector.extract_strided_slice %125 {offsets = [4, 0], sizes = [16, 32], strides = [1, 1]} : vector<24x32xf32> to vector<16x32xf32>
    %128 = vector.extract_strided_slice %125 {offsets = [8, 0], sizes = [16, 32], strides = [1, 1]} : vector<24x32xf32> to vector<16x32xf32>
    %129 = tpu.concatenate %126, %127, %128 in 1 : vector<16x32xf32>, vector<16x32xf32>, vector<16x32xf32> -> vector<16x96xf32>
    %c496 = arith.constant 496 : index
    %c0_49 = arith.constant 0 : index
    %130 = vector.load %arg2[%c496, %c0_49] : memref<616x128xf32, #tpu.memory_space<vmem>>, vector<96x32xf32>
    %c592 = arith.constant 592 : index
    %c0_50 = arith.constant 0 : index
    %131 = vector.load %arg2[%c592, %c0_50] : memref<616x128xf32, #tpu.memory_space<vmem>>, vector<1x32xf32>
    %cst_51 = arith.constant dense<0.000000e+00> : vector<16x32xf32>
    %132 = tpu.matmul %129, %130, %cst_51 {dimension_numbers = #tpu.dot_dimension_numbers<[1], [0], [0], [1], [0, 0, 1, 1], [], []>} : vector<16x96xf32>, vector<96x32xf32>, vector<16x32xf32> -> vector<16x32xf32>
    %133 = vector.broadcast %131 : vector<1x32xf32> to vector<16x32xf32>
    %134 = arith.addf %132, %133 : vector<16x32xf32>
    %cst_52 = arith.constant 0.000000e+00 : f32
    %135 = vector.broadcast %cst_52 : f32 to vector<16x32xf32>
    %136 = arith.maximumf %134, %135 : vector<16x32xf32>
    %c600 = arith.constant 600 : index
    %c0_53 = arith.constant 0 : index
    %137 = vector.load %arg2[%c600, %c0_53] : memref<616x128xf32, #tpu.memory_space<vmem>>, vector<2x32xf32>
    %c608 = arith.constant 608 : index
    %c0_54 = arith.constant 0 : index
    %138 = vector.load %arg2[%c608, %c0_54] : memref<616x128xf32, #tpu.memory_space<vmem>>, vector<2x32xf32>
    %cst_55 = arith.constant dense<0.000000e+00> : vector<32xf32>
    %139 = vector.multi_reduction <add>, %136, %cst_55 [0] : vector<16x32xf32> to vector<32xf32>
    %140 = vector.shape_cast %139 : vector<32xf32> to vector<1x32xf32>
    %cst_56 = arith.constant 1.600000e+01 : f32
    %141 = vector.broadcast %cst_56 : f32 to vector<1x32xf32>
    %142 = arith.divf %140, %141 : vector<1x32xf32>
    %143 = vector.broadcast %142 : vector<1x32xf32> to vector<2x32xf32>
    %144 = arith.mulf %137, %143 : vector<2x32xf32>
    %cst_57 = arith.constant dense<0.000000e+00> : vector<2xf32>
    %145 = vector.multi_reduction <add>, %144, %cst_57 [1] : vector<2x32xf32> to vector<2xf32>
    %146 = vector.shape_cast %145 : vector<2xf32> to vector<2x1xf32>
    %cst_58 = arith.constant 0.000000e+00 : f32
    %147 = vector.broadcast %cst_58 : f32 to vector<2x1xf32>
    %148 = arith.maximumf %146, %147 : vector<2x1xf32>
    %149 = vector.broadcast %148 : vector<2x1xf32> to vector<2x32xf32>
    %150 = arith.mulf %149, %138 : vector<2x32xf32>
    %cst_59 = arith.constant dense<0.000000e+00> : vector<32xf32>
    %151 = vector.multi_reduction <add>, %150, %cst_59 [0] : vector<2x32xf32> to vector<32xf32>
    %152 = vector.shape_cast %151 : vector<32xf32> to vector<1x32xf32>
    %153 = arith.negf %152 : vector<1x32xf32>
    %154 = math.exp %153 : vector<1x32xf32>
    %cst_60 = arith.constant 1.000000e+00 : f32
    %155 = vector.broadcast %cst_60 : f32 to vector<1x32xf32>
    %156 = arith.addf %155, %154 : vector<1x32xf32>
    %157 = arith.divf %155, %156 : vector<1x32xf32>
    %158 = vector.broadcast %157 : vector<1x32xf32> to vector<16x32xf32>
    %159 = arith.mulf %136, %158 : vector<16x32xf32>
    %160 = arith.addf %159, %110 : vector<16x32xf32>
    %c0_61 = arith.constant 0 : index
    %c0_62 = arith.constant 0 : index
    %c0_63 = arith.constant 0 : index
    %161 = vector.load %arg3[%c0_61, %c0_62, %c0_63] : memref<1x16x32xf32, #tpu.memory_space<vmem>>, vector<1x16x32xf32>
    %162 = vector.shape_cast %161 : vector<1x16x32xf32> to vector<16x32xf32>
    %163 = vector.shape_cast %160 : vector<16x32xf32> to vector<1x16x32xf32>
    tpu.vector_store %arg3[%c0_61, %c0_62, %c0_63], %163 {strides = array<i32>} : memref<1x16x32xf32, #tpu.memory_space<vmem>>, vector<1x16x32xf32>,
    return
  }
  func.func @transform_0(%arg0: i32) -> (i32, i32, i32) {
    %c0_i32 = arith.constant 0 : i32
    %c0_i32_0 = arith.constant 0 : i32
    %c0_i32_1 = arith.constant 0 : i32
    return %arg0, %c0_i32, %c0_i32_0 : i32, i32, i32
  }
  func.func @transform_1(%arg0: i32) -> (i32, i32) {
    %c0_i32 = arith.constant 0 : i32
    %c0_i32_0 = arith.constant 0 : i32
    %c0_i32_1 = arith.constant 0 : i32
    return %c0_i32, %c0_i32_0 : i32, i32
  }
  func.func @transform_2(%arg0: i32) -> (i32, i32, i32) {
    %c0_i32 = arith.constant 0 : i32
    %c0_i32_0 = arith.constant 0 : i32
    %c0_i32_1 = arith.constant 0 : i32
    return %arg0, %c0_i32, %c0_i32_0 : i32, i32, i32
  }
}

</mosaic_0001>

<bundles_post_ra>
// kernel: tpu_custom_call.1
= control target key start
LH: loop header
LB: loop body
LE: loop exit
PB: predicated region body
PF: predicated region fallthrough
CT: control target
= control target key end

     0   :  { %7 = vsyncpa [#allocation3], 0  ;;  %s2086_s0 = inlined_call_operand.vmem [shape: f32[2,16,8], index: 0, kind: input, shape index: {}]   ;;  %s2087_s1 = inlined_call_operand.hbm [shape: f32[616,128], index: 1, kind: input, shape index: {}]   ;;  %s2088_s2 = inlined_call_operand.hbm [shape: f32[2,16,32], index: 2, kind: output, shape index: {}]  }
   0x1   :  { %8 = vsyncpa [#allocation4], 0 }
   0x2   :  { %10 = vsyncpa [#allocation4 + $0x1], 0  ;;  %s1814_s9 = smov 0   ;;  %s1816_s10 = smov 0  }
   0x3   :  { %s1818_s11 = smov 0   ;;  %s1820_s12 = smov 0  }
   0x4 LB: > { %s1835_s13 = sadd.s32 4294967295, %s1787_s12   ;;  %s1232_s14 = sadd.s32 4294967294, %s1787_s12   ;;  %s1787_s12 = sphi %s1820_s12, %s2104_s12   ;;  %s1783_s11 = sphi %s1818_s11, %s2103_s11   ;;  %s1779_s10 = sphi %s1816_s10, %s2102_s10   ;;  %s1775_s9 = sphi %s1814_s9, %s2101_s9  }
   0x5   : > { %s1839_s15 = sadd.s32 1, %s1787_s12   ;;  %s70_s16 = sadd.s32 1, %s1783_s11 }
   0x6   : > { %s67_s17 = ssub.s32 %s1787_s12, %s1839_s15  ;;  %p80_p0 = scmp.ne.s32.totalorder %s1783_s11, %s1779_s10 }
   0x7   : > { %p68_p1 = scmp.eq.s32.totalorder %s67_s17, 0  ;;  %p81_p2 = scmp.eq.s32.totalorder %s1835_s13, 1 }
   0x8   : > { %p86_p3 = scmp.ne.s32.totalorder %s1779_s10, %s1775_s9  ;;  %p87_p4 = scmp.eq.s32.totalorder %s1232_s14, 1 }
   0x9   : > { %s1850_s18 = scalar_select %p68_p1, %s1783_s11, %s70_s16  }
   0xa   : > { %p1852_p5 = por %p81_p2, %p80_p0  ;;  %p1856_p6 = por %p87_p4, %p86_p3 }
   0xb   : > { %p1233_p7 = scmp.ge.s32.totalorder %s1787_s12, 1  ;;  %p94_p8 = scmp.lt.s32.totalorder %s1787_s12, 3 }
   0xc   : > { %s2092_s19 = scalar_select %p1852_p5, 1, 0 }
   0xd   : > { %s2093_s20 = scalar_select %p1856_p6, 1, 0 }
   0xe   : > { %p2089_p9 = scmp.eq.s32.totalorder %s1835_s13, 0  ;;  %p1863_p10 = pnand %p1233_p7, %p94_p8 }
   0xf   : > { %s1789_s22 = smov [#allocation2]   ;;  %s1693_s27 = scalar_lea.hbm %s2087_s1, 9856 }
  0x10   : > { %s2094_s21 = scalar_select %p1863_p10, 1, 0 }
  0x11   : > { %s106_s23 = sshll.u32 %s1789_s22, 4  ;;  %p1629_p11 = pneg %p1863_p10  ;;  %s107_s23 = int_to_ptr.vmem [resolvable:$true] %s106_s23 }
  0x12   : > { %p1694_p13 = scmp.ne.s32.totalorder %s2087_s1, %s1693_s27  ;;  %p1700_p3 = scmp.lt.u32.totalorder %s1693_s27, %s2087_s1 }
  0x13   : > { %p1871_p12 = pnand %p2089_p9, %p1629_p11 }
  0x15   : > { %p1695_p0 = pneg %p1871_p12 }
  0x17   : > { %p1696_p1 = pnand %p1695_p0, %p1694_p13 }
  0x19   : > { %p1697_p2 = pneg %p1696_p1 }
  0x1b   : > { %p1702_p4 = pnand %p1700_p3, %p1697_p2 }
  0x1d   : > { %1705 = shalt.err (!%p1702_p4)
}
  0x1e   : > { %s1706_s4 = scalar_lea.vmem %s107_s23, 9856  ;;  %p1714_p9 = scmp.lt.s32.totalorder %s107_s23, %s107_s23 }
  0x1f   : > { %p1707_p7 = scmp.ne.s32.totalorder %s107_s23, %s1706_s4  ;;  %p1715_p6 = scmp.lt.s32.totalorder %s1706_s4, %s1706_s4 }
  0x21   : > { %p1709_p8 = pnand %p1707_p7, %p1695_p0  ;;  %p1716_p5 = por %p1715_p6, %p1714_p9 }
  0x23   : > { %p1710_p11 = pneg %p1709_p8 }
  0x25   : > { %p1717_p10 = pnand %p1716_p5, %p1710_p11 }
  0x27   : > { %1720 = shalt.err (!%p1717_p10)
}
  0x28   : > { %s1790_s5 = smov 128   ;;  %s1791_s6 = smov 8  }
  0x29   : > { %1632 = dma.hbm_to_vmem [thread:$0]  (!%p1871_p12), %s2087_s1, 9856, %s107_s23, [#allocation3], %s1790_s5, %s1790_s5, %s1791_s6  }
  0x2a   : > { %p2096_p13 = scmp.ne.s32.totalorder %s2094_s21, 0 }
  0x2b   : > { %p2097_p1 = scmp.eq.s32.totalorder (!%p2096_p13), %s1835_s13, 0 }
  0x2c   : > { %130 = sbr.rel (%p2096_p13) target bundleno = 2784 (0xae0), region = 28 }
  0x33   : > { %1766 = dma.done.wait (%p2097_p1), [#allocation3], 9856   ;;  %p2098_p0 = pmov %p2097_p1 }
  0x34   : > { %p152_p5 = scmp.lt.s32.totalorder %s1835_s13, 1  ;;  %vm161_vm0 = vcmask 1041408   ;;  %v199_v2 = vld [vmem:[#allocation2] sm:$0xff]  ;;  %v200_v5 = vld [vmem:[#allocation2 + $0x8] sm:$0xff]  ;;  %vm169_vm1 = vcmask 1046528   ;;  %vm181_vm2 = vcmask 1045504  }
  0x35   : > { %1768 = vsyncadd (%p2098_p0), [#allocation3], 4294957440  ;;  %v1499_v6 = vpack.c.bf16 %v200_v5, %v199_v2  ;;  %v201_v11 = vld [vmem:[#allocation2 + $0x10] sm:$0xff]  ;;  %s1792_s21 = smov 8   ;;  %s1793_s23 = smov 16   ;;  %vm193_vm3 = vcmask 64512  }
  0x36   : > { %s153_s14 = scalar_select %p152_p5, %s1835_s13, 1  ;;  %vm196_vm4 = vcmask 130048   ;;  %vm207_vm5 = vcmask 195584   ;;  %v328_v28 = vld [vmem:[#allocation2 + $0x20] sm:$0xff]  ;;  %v329_v29 = vld [vmem:[#allocation2 + $0x28] sm:$0xff]  ;;  %v330_v30 = vld [vmem:[#allocation2 + $0x30] sm:$0xff] }
  0x37   : > { %1500 = vmatprep.subr.bf16.mxu0 %v1499_v6  ;;  %v1503_v31 = vpack.c.bf16 %v329_v29, %v328_v28  ;;  %v331_v32 = vld [vmem:[#allocation2 + $0x38] sm:$0xff]  ;;  %v332_v34 = vld [vmem:[#allocation2 + $0x40] sm:$0xff]  ;;  %v333_v35 = vld [vmem:[#allocation2 + $0x48] sm:$0xff]  ;;  %s1794_s25 = smov 32   ;;  %s1795_s26 = smov 64   ;;  %vm322_vm6 = vcmask 261120  }
  0x38   : > { %s1270_s16 = sshll.u32 %s153_s14, 4  ;;  %1502 = vmatpush3.bf16.msra.mxu0 %v1499_v6  ;;  %v1507_v33 = vpack.c.bf16 %v331_v32, %v330_v30  ;;  %v1511_v36 = vpack.c.bf16 %v333_v35, %v332_v34  ;;  %v334_v37 = vld [vmem:[#allocation2 + $0x50] sm:$0xff]  ;;  %v335_v38 = vld [vmem:[#allocation2 + $0x58] sm:$0xff]  ;;  %v336_v40 = vld [vmem:[#allocation2 + $0x60] sm:$0xff]  ;;  %vm325_vm7 = vcmask 523264   ;;  %vm345_vm8 = vcmask 785408  }
  0x39   : > { %s156_s24 = scalar_lea.vmem %s2086_s0, %s1270_s16  ;;  %1354 = vmatprep.subr.mxu0 %v201_v11  ;;  %1504 = vmatprep.subr.bf16.mxu1 %v1503_v31  ;;  %v1515_v39 = vpack.c.bf16 %v335_v38, %v334_v37  ;;  %v337_v41 = vld [vmem:[#allocation2 + $0x68] sm:$0xff]  ;;  %v1241_v43 = vld [vmem:[#allocation2 + $0x18] ss:$0 sm:$0xff]  ;;  %v338_v44 = vld [vmem:[#allocation2 + $0x70] sm:$0xff]  ;;  %vm528_vm9 = vcmask 254976   ;;  %vm555_vm10 = vcmask 1043456  }
  0x3a   : > { %v157_v0 = vld [vmem:[%s156_s24] sm:$0xff]  ;;  %v1902_v1 = vld [vmem:[%s156_s24 + $0x8] sm:$0xff]  ;;  %1506 = vmatpush3.bf16.msra.mxu1 %v1503_v31  ;;  %v1519_v42 = vpack.c.bf16 %v337_v41, %v336_v40  ;;  %v339_v45 = vld [vmem:[#allocation2 + $0x78] sm:$0xff]  ;;  %s149_s27 = sand.u32 1, %s1779_s10   ;;  %s1271_s29 = sshll.u32 %s1835_s13, 8 }
  0x3b   : > { %v162_v3 = vrot.slane %v157_v0, 6  ;;  %v163_v4 = vrot.slane %v1902_v1, 6  ;;  %1508 = vmatprep.subr.bf16.mxu1 %v1507_v33  ;;  %v1523_v46 = vpack.c.bf16 %v339_v45, %v338_v44  ;;  %v429_v54 = vld [vmem:[#allocation2 + $0x98] sm:$0xff]  ;;  %v514_v28 = vld [vmem:[#allocation2 + $0x88] sm:$0x3]  ;;  %v590_v35 = vld [vmem:[#allocation2 + $0xb0] sm:$0xff]  ;;  %s2036_s6 = scalar_lea.hbm %s2088_s2, %s1271_s29 }
  0x3c   : > { %1355 = vmatpush3.msra.mxu0 %v201_v11  ;;  %v589_v34 = vld [vmem:[#allocation2 + $0xa8] sm:$0xff]  ;;  %v592_v38 = vld [vmem:[#allocation2 + $0xc0] sm:$0xff]  ;;  %v594_v41 = vld [vmem:[#allocation2 + $0xd0] sm:$0xff]  ;;  %s1238_s28 = sshll.u32 %s149_s27, 4  ;;  %s2044_s13 = scalar_lea.sflag [#allocation4], %s149_s27 }
  0x3d   : > { %v164_v7 = vsel %vm161_vm0, %v162_v3, %v163_v4  ;;  %v167_v8 = vsel %vm161_vm0, 0.0, %v162_v3  ;;  %v173_v9 = vrot.slane %v163_v4, 1  ;;  %v185_v10 = vrot.slane %v163_v4, 2  ;;  %1386 = vmatprep.subr.mxu0 %v429_v54  ;;  %v593_v40 = vld [vmem:[#allocation2 + $0xc8] sm:$0xff]  ;;  %s151_s30 = scalar_lea.vmem [#allocation5], %s1238_s28  ;;  %p2099_p9 = scmp.ne.s32.totalorder %s2092_s19, 0 }
  0x3e   : > { %v170_v12 = vrot.slane %v167_v8, 1  ;;  %v171_v13 = vrot.slane %v164_v7, 1  ;;  %v182_v14 = vrot.slane %v167_v8, 2  ;;  %v183_v15 = vrot.slane %v164_v7, 2  ;;  %1510 = vmatpush3.bf16.msra.mxu1 %v1507_v33  ;;  %s1158_s3 = sshll.u32 %s151_s30, 4  ;;  %s1797_s8 = smov [#allocation5]   ;;  %s2040_s3 = int_to_ptr.vmem [resolvable:$true] %s1158_s3 }
  0x3f   : > { %1512 = vmatprep.subr.bf16.mxu1 %v1511_v36  ;;  %v1527_v37 = vpack.c.bf16 %v590_v35, %v589_v34  ;;  %v724_v34 = vld [vmem:[#allocation2 + $0x110] sm:$0xff]  ;;  %v725_v35 = vld [vmem:[#allocation2 + $0x118] sm:$0xff]  ;;  %s1721_s7 = scalar_lea.vmem %s2040_s3, 256  ;;  %s1725_s14 = sshll.u32 %s1797_s8, 4  ;;  %s1726_s14 = int_to_ptr.vmem [resolvable:$false] %s1725_s14 }
  0x40   : > { %v172_v16 = vsel %vm169_vm1, %v170_v12, %v171_v13  ;;  %v184_v17 = vsel %vm181_vm2, %v182_v14, %v183_v15  ;;  %v174_v18 = vsel %vm169_vm1, %v171_v13, %v173_v9  ;;  %v186_v19 = vsel %vm181_vm2, %v183_v15, %v185_v10  ;;  %v1244_v12 = vld [vmem:[#allocation2 + $0x80] ss:$0 sm:$0xff]  ;;  %p1722_p6 = scmp.ne.s32.totalorder %s2040_s3, %s1721_s7  ;;  %s1727_s16 = scalar_lea.vmem %s1726_s14, 512 }
  0x41   : > { %175 = vrot.lane.b32.xlu0 %v172_v16, %s1792_s21  ;;  %187 = vrot.lane.b32.xlu1 %v184_v17, %s1793_s23  ;;  %p1728_p2 = scmp.lt.s32.totalorder %s2040_s3, %s1726_s14  ;;  %p1729_p3 = scmp.lt.s32.totalorder %s1727_s16, %s1721_s7 }
  0x42   : > { %1514 = vmatpush3.bf16.msra.mxu1 %v1511_v36  ;;  %v591_v36 = vld [vmem:[#allocation2 + $0xb8] sm:$0xff]  ;;  %p1723_p10 = pnand %p1722_p6, %p2099_p9 }
  0x43   : > { %1516 = vmatprep.subr.bf16.mxu1 %v1515_v39  ;;  %p1730_p4 = por %p1729_p3, %p1728_p2 }
  0x44   : > { %p1724_p12 = pneg %p1723_p10 }
  0x45   : > { %177 = vrot.lane.b32.xlu0 %v174_v18, %s1792_s21  ;;  %189 = vrot.lane.b32.xlu1 %v186_v19, %s1793_s23 }
  0x46   : > { %1518 = vmatpush3.bf16.msra.mxu1 %v1515_v39  ;;  %v1531_v39 = vpack.c.bf16 %v592_v38, %v591_v36  ;;  %v726_v36 = vld [vmem:[#allocation2 + $0x120] sm:$0xff]  ;;  %v727_v38 = vld [vmem:[#allocation2 + $0x128] sm:$0xff]  ;;  %p1731_p7 = pnand %p1730_p4, %p1724_p12 }
  0x47   : > { %1520 = vmatprep.subr.bf16.mxu1 %v1519_v42 }
  0x4a   : > { %1522 = vmatpush3.bf16.msra.mxu1 %v1519_v42  ;;  %v1535_v42 = vpack.c.bf16 %v594_v41, %v593_v40  ;;  %v728_v40 = vld [vmem:[#allocation2 + $0x130] sm:$0xff]  ;;  %v729_v41 = vld [vmem:[#allocation2 + $0x138] sm:$0xff] }
  0x4b   : > { %1524 = vmatprep.subr.bf16.mxu1 %v1523_v46 }
  0x4e   : > { %1526 = vmatpush3.bf16.msra.mxu1 %v1523_v46 }
  0xb3   : > { %v176_v20 = vpop.permute.xlu0 %175  ;;  %v188_v21 = vpop.permute.xlu1 %187 }
  0xb4   : > { %v194_v22 = vsel %vm193_vm3, %v167_v8, %v176_v20 }
  0xb5   : > { %v197_v23 = vsel %vm196_vm4, %v194_v22, %v188_v21 }
  0xb6   : > { %1356 = vmatprep.mubr.msk.f32.mxu0 %vm207_vm5, %v197_v23 }
  0xb7   : > { %v178_v24 = vpop.permute.xlu0 %177  ;;  %v190_v25 = vpop.permute.xlu1 %189 }
  0xb8   : > { %v195_v26 = vsel %vm193_vm3, %v164_v7, %v178_v24 }
  0xb9   : > { %v198_v27 = vsel %vm196_vm4, %v195_v26, %v190_v25 }
  0xba   : > { %1357 = vmatmul.mubr.msk.f32.vlgmr.msra.gmra.mrb[0].mxu0 %vm207_vm5, %v198_v27 }
  0xbb   : > { %1388 = vmatprep.mubr.msk.f32.mxu0 %vm193_vm3, %v157_v0  ;;  %1387 = vmatpush3.msra.mxu0 %v429_v54 }
  0xbc   : > { %1528 = vmatprep.subr.bf16.mxu0 %v1527_v37 }
  0xbe   : > { %1389 = vmatmul.mubr.msk.f32.vlgmr.msra.gmra.mrb[2].mxu0 %vm193_vm3, %v1902_v1 }
  0xbf   : > { %1530 = vmatpush3.bf16.msra.mxu0 %v1527_v37  ;;  %v1551_v37 = vpack.c.bf16 %v725_v35, %v724_v34 }
  0xc0   : > { %1532 = vmatprep.subr.bf16.mxu0 %v1531_v39 }
  0xc1   : > { %1552 = vmatprep.subr.bf16.mxu1 %v1551_v37 }
  0xc3   : > { %1534 = vmatpush3.bf16.msra.mxu0 %v1531_v39  ;;  %v1555_v39 = vpack.c.bf16 %v727_v38, %v726_v36 }
  0xc4   : > { %1536 = vmatprep.subr.bf16.mxu0 %v1535_v42 }
  0xc7   : > { %1538 = vmatpush3.bf16.msra.mxu0 %v1535_v42  ;;  %v1559_v42 = vpack.c.bf16 %v729_v41, %v728_v40  ;;  %v885_v41 = vld [vmem:[#allocation2 + $0x188] sm:$0xff] }
 0x18d   : > { %v1358_v47 = vpop.f32.mrb[0].mxu0 }
 0x18e   : > { %v286_v48 = vadd.f32 %v1358_v47, %v1241_v43  ;;  %v280_v49 = vpop.f32.mrb[1].mxu0 }
 0x18f   : > { %v281_v50 = vadd.f32 %v1241_v43, %v280_v49  ;;  %v515_v43 = vld [vmem:[#allocation2 + $0x90] sm:$0x3] }
 0x190   : > { %v290_v51 = vmax.f32 %v286_v48, 0.0 }
 0x191   : > { %v289_v52 = vmax.f32 %v281_v50, 0.0  ;;  %v1390_v32 = vpop.f32.mrb[2].mxu0 }
 0x192   : > { %v294_v53 = vrot.slane %v290_v51, 6  ;;  %v505_v33 = vpop.f32.mrb[3].mxu0 }
 0x193   : > { %v293_v55 = vrot.slane %v289_v52, 6 }
 0x194   : > { %v303_v58 = vrot.slane %v294_v53, 1  ;;  %v314_v2 = vrot.slane %v294_v53, 2 }
 0x195   : > { %v295_v56 = vsel %vm161_vm0, %v293_v55, %v294_v53  ;;  %v298_v57 = vsel %vm161_vm0, 0.0, %v293_v55 }
 0x196   : > { %v300_v59 = vrot.slane %v298_v57, 1  ;;  %v301_v60 = vrot.slane %v295_v56, 1  ;;  %v311_v61 = vrot.slane %v298_v57, 2  ;;  %v312_v0 = vrot.slane %v295_v56, 2 }
 0x198   : > { %v304_v62 = vsel %vm169_vm1, %v301_v60, %v303_v58  ;;  %v302_v63 = vsel %vm169_vm1, %v300_v59, %v301_v60  ;;  %v315_v3 = vsel %vm181_vm2, %v312_v0, %v314_v2  ;;  %v313_v4 = vsel %vm181_vm2, %v311_v61, %v312_v0  ;;  %v595_v58 = vld [vmem:[#allocation2 + $0xd8] sm:$0xff]  ;;  %v596_v59 = vld [vmem:[#allocation2 + $0xe0] sm:$0xff] }
 0x199   : > { %307 = vrot.lane.b32.xlu1 %v304_v62, %s1794_s25  ;;  %305 = vrot.lane.b32.xlu0 %v302_v63, %s1794_s25  ;;  %v1539_v62 = vpack.c.bf16 %v596_v59, %v595_v58  ;;  %v735_v58 = vld [vmem:[#allocation2 + $0x168] sm:$0xff] }
 0x19b   : > { %1540 = vmatprep.subr.bf16.mxu0 %v1539_v62 }
 0x19c   : > { %1542 = vmatpush3.bf16.msra.mxu0 %v1539_v62 }
 0x19d   : > { %318 = vrot.lane.b32.xlu1 %v315_v3, %s1795_s26  ;;  %316 = vrot.lane.b32.xlu0 %v313_v4, %s1795_s26  ;;  %v597_v3 = vld [vmem:[#allocation2 + $0xe8] sm:$0xff]  ;;  %v598_v4 = vld [vmem:[#allocation2 + $0xf0] sm:$0xff] }
 0x20b   : > { %v308_v1 = vpop.permute.xlu1 %307  ;;  %v306_v5 = vpop.permute.xlu0 %305 }
 0x20c   : > { %v324_v6 = vsel %vm322_vm6, %v295_v56, %v308_v1  ;;  %v323_v7 = vsel %vm322_vm6, %v298_v57, %v306_v5  ;;  %v1247_v57 = vld [vmem:[#allocation2 + $0xa0] ss:$0 sm:$0xff] }
 0x20d   : > { %v511_v60 = vadd.f32 %v1390_v32, %v1247_v57  ;;  %v506_v61 = vadd.f32 %v1247_v57, %v505_v33  ;;  %v734_v57 = vld [vmem:[#allocation2 + $0x160] sm:$0xff] }
 0x20f   : > { %v319_v8 = vpop.permute.xlu1 %318  ;;  %v317_v9 = vpop.permute.xlu0 %316 }
 0x210   : > { %v327_v10 = vsel %vm325_vm7, %v324_v6, %v319_v8  ;;  %v326_v11 = vsel %vm325_vm7, %v323_v7, %v317_v9  ;;  %v1543_v6 = vpack.c.bf16 %v598_v4, %v597_v3  ;;  %v599_v9 = vld [vmem:[#allocation2 + $0xf8] sm:$0xff] }
 0x211   : > { %1383 = vmatprep.mubr.msk.f32.mxu1 %vm345_vm8, %v326_v11 }
 0x212   : > { %1384 = vmatmul.mubr.msk.f32.vlgmr.msra.gmra.mrb[0].mxu1 %vm345_vm8, %v327_v10  ;;  %1544 = vmatprep.subr.bf16.mxu0 %v1543_v6  ;;  %v600_v10 = vld [vmem:[#allocation2 + $0x100] sm:$0xff] }
 0x213   : > { %1546 = vmatpush3.bf16.msra.mxu0 %v1543_v6  ;;  %1554 = vmatpush3.bf16.msra.mxu1 %v1551_v37  ;;  %v824_v37 = vld [vmem:[#allocation2 + $0x178] sm:$0x3] }
 0x214   : > { %1556 = vmatprep.subr.bf16.mxu1 %v1555_v39 }
 0x217   : > { %1558 = vmatpush3.bf16.msra.mxu1 %v1555_v39 }
 0x218   : > { %1560 = vmatprep.subr.bf16.mxu1 %v1559_v42 }
 0x21b   : > { %1562 = vmatpush3.bf16.msra.mxu1 %v1559_v42  ;;  %v886_v42 = vld [vmem:[#allocation2 + $0x190] sm:$0xff] }
 0x2e5   : > { %v1385_v13 = vpop.f32.mrb[0].mxu1 }
 0x2e6   : > { %v424_v14 = vadd.f32 %v1385_v13, %v1244_v12  ;;  %v418_v15 = vpop.f32.mrb[1].mxu1  ;;  %v1547_v13 = vpack.c.bf16 %v600_v10, %v599_v9 }
 0x2e7   : > { %v419_v16 = vadd.f32 %v1244_v12, %v418_v15 }
 0x2e8   : > { %v428_v17 = vmax.f32 %v424_v14, 0.0  ;;  %1548 = vmatprep.subr.bf16.mxu0 %v1547_v13 }
 0x2e9   : > { %v427_v18 = vmax.f32 %v419_v16, 0.0  ;;  %1550 = vmatpush3.bf16.msra.mxu0 %v1547_v13 }
 0x2ea   : > { %v517_v19 = vsel %vm322_vm6, %v428_v17, 0.0 }
 0x2eb   : > { %v516_v20 = vsel %vm322_vm6, %v427_v18, 0.0 }
 0x2ec   : > { %v518_v21 = vadd.f32 %v517_v19, %v516_v20 }
 0x2ee   : > { %v519_v22 = vrot.slane %v518_v21, 4 }
 0x2f0   : > { %v520_v23 = vadd.f32 %v519_v22, %v518_v21 }
 0x2f2   : > { %v521_v24 = vrot.slane %v520_v23, 2 }
 0x2f4   : > { %v522_v25 = vadd.f32 %v521_v24, %v520_v23 }
 0x2f6   : > { %v523_v26 = vrot.slane %v522_v25, 1 }
 0x2f8   : > { %v524_v27 = vadd.f32 %v523_v26, %v522_v25 }
 0x2fa   : > { %v526_v29 = vmul.f32 0.0625, %v524_v27 }
 0x2fc   : > { %v527_v30 = vmul.f32 %v526_v29, %v514_v28 }
 0x2fe   : > { %v529_v31 = vsel %vm528_vm9, %v527_v30, 0.0 }
 0x2ff   : > { %530 = vadd.xlane.f32.xlu0 %v529_v31 }
 0x38c   : > { %v531_v44 = vpop.xlane.xlu0 %530 }
 0x38d   : > { %v532_v45 = vmax.f32 %v531_v44, 0.0  ;;  %v731_v44 = vld [vmem:[#allocation2 + $0x148] sm:$0xff] }
 0x38f   : > { %v533_v46 = vmul.f32 %v532_v45, %v515_v43  ;;  %v730_v43 = vld [vmem:[#allocation2 + $0x140] sm:$0xff]  ;;  %v1251_v45 = vld [vmem:[#allocation2 + $0x108] ss:$0 sm:$0xff] }
 0x391   : > { %v534_v47 = vsel %vm528_vm9, %v533_v46, 0.0  ;;  %v1563_v46 = vpack.c.bf16 %v731_v44, %v730_v43  ;;  %v887_v43 = vld [vmem:[#allocation2 + $0x198] sm:$0xff]  ;;  %v1575_v44 = vpack.c.bf16 %v886_v42, %v885_v41  ;;  %v1015_v42 = vld [vmem:[#allocation2 + $0x230] sm:$0xff] }
 0x392   : > { %v535_v48 = vrot.slane %v534_v47, 4 }
 0x393   : > { %1564 = vmatprep.subr.bf16.mxu1 %v1563_v46  ;;  %1576 = vmatprep.subr.bf16.mxu0 %v1575_v44 }
 0x394   : > { %v536_v49 = vadd.f32 %v535_v48, %v534_v47  ;;  %1566 = vmatpush3.bf16.msra.mxu1 %v1563_v46 }
 0x396   : > { %v537_v50 = vrot.slane %v536_v49, 2 }
 0x398   : > { %v538_v51 = vadd.f32 %v537_v50, %v536_v49  ;;  %v732_v50 = vld [vmem:[#allocation2 + $0x150] sm:$0xff] }
 0x39a   : > { %v539_v52 = vrot.slane %v538_v51, 1 }
 0x39c   : > { %v540_v53 = vadd.f32 %v539_v52, %v538_v51  ;;  %v733_v51 = vld [vmem:[#allocation2 + $0x158] sm:$0xff] }
 0x39e   : > { %v1250_v54 = vmul.f32 -1.442695, %v540_v53  ;;  %v1567_v53 = vpack.c.bf16 %v733_v51, %v732_v50  ;;  %v891_v50 = vld [vmem:[#allocation2 + $0x1b8] sm:$0xff]  ;;  %v892_v51 = vld [vmem:[#allocation2 + $0x1c0] sm:$0xff] }
 0x3a0   : > { %1681 = vpow2.f32 %v1250_v54  ;;  %1568 = vmatprep.subr.bf16.mxu1 %v1567_v53 }
 0x3a1   : > { %1570 = vmatpush3.bf16.msra.mxu1 %v1567_v53  ;;  %v825_v53 = vld [vmem:[#allocation2 + $0x180] sm:$0x3] }
 0x3aa   : > { %v1682_v55 = vpop.eup %1681 }
 0x3ab   : > { %v544_v56 = vadd.f32 1.0, %v1682_v55 }
 0x3ad   : > { %1683 = vrcp.f32 %v544_v56 }
 0x3b7   : > { %v1684_v63 = vpop.eup %1683 }
 0x3b8   : > { %v548_v0 = vmul.f32 %v1684_v63, %v428_v17  ;;  %v547_v2 = vmul.f32 %v1684_v63, %v427_v18 }
 0x3ba   : > { %v1938_v1 = vadd.f32 %v548_v0, %v511_v60  ;;  %v1940_v5 = vadd.f32 %v547_v2, %v506_v61  ;;  %v1571_v60 = vpack.c.bf16 %v735_v58, %v734_v57 }
 0x3bc   : > { %v552_v7 = vmax.f32 %v1938_v1, 0.0  ;;  %v551_v8 = vmax.f32 %v1940_v5, 0.0  ;;  %1572 = vmatprep.subr.bf16.mxu1 %v1571_v60 }
 0x3bd   : > { %1574 = vmatpush3.bf16.msra.mxu1 %v1571_v60 }
 0x3be   : > { %v557_v11 = vrot.slane %v552_v7, 4  ;;  %v556_v12 = vrot.slane %v551_v8, 4 }
 0x3c0   : > { %v561_v14 = vsel %vm555_vm10, 0.0, %v556_v12  ;;  %v558_v15 = vsel %vm555_vm10, %v556_v12, %v557_v11  ;;  %v566_v19 = vrot.slane %v557_v11, 2  ;;  %v577_v24 = vrot.slane %v557_v11, 4 }
 0x3c1   : > { %v563_v16 = vrot.slane %v561_v14, 2  ;;  %v564_v17 = vrot.slane %v558_v15, 2  ;;  %v574_v21 = vrot.slane %v561_v14, 4  ;;  %v575_v22 = vrot.slane %v558_v15, 4 }
 0x3c3   : > { %v565_v18 = vsel %vm181_vm2, %v563_v16, %v564_v17  ;;  %v567_v20 = vsel %vm181_vm2, %v564_v17, %v566_v19  ;;  %v576_v23 = vsel %vm555_vm10, %v574_v21, %v575_v22  ;;  %v578_v25 = vsel %vm555_vm10, %v575_v22, %v577_v24  ;;  %v1254_v21 = vld [vmem:[#allocation2 + $0x170] ss:$0 sm:$0xff] }
 0x3c4   : > { %568 = vrot.lane.b32.xlu1 %v565_v18, %s1794_s25 }
 0x3c8   : > { %570 = vrot.lane.b32.xlu1 %v567_v20, %s1794_s25 }
 0x3cc   : > { %579 = vrot.lane.b32.xlu1 %v576_v23, %s1795_s26 }
 0x3d0   : > { %581 = vrot.lane.b32.xlu1 %v578_v25, %s1795_s26 }
 0x436   : > { %v569_v26 = vpop.permute.xlu1 %568 }
 0x437   : > { %v585_v28 = vsel %vm322_vm6, %v561_v14, %v569_v26 }
 0x43a   : > { %v571_v27 = vpop.permute.xlu1 %570 }
 0x43b   : > { %v586_v31 = vsel %vm322_vm6, %v558_v15, %v571_v27 }
 0x43e   : > { %v580_v29 = vpop.permute.xlu1 %579 }
 0x43f   : > { %v587_v30 = vsel %vm325_vm7, %v585_v28, %v580_v29 }
 0x440   : > { %1415 = vmatprep.mubr.msk.f32.mxu0 %vm345_vm8, %v587_v30 }
 0x442   : > { %v582_v32 = vpop.permute.xlu1 %581 }
 0x443   : > { %v588_v33 = vsel %vm325_vm7, %v586_v31, %v582_v32 }
 0x444   : > { %1416 = vmatmul.mubr.msk.f32.vlgmr.msra.gmra.mrb[4].mxu0 %vm345_vm8, %v588_v33 }
 0x445   : > { %1578 = vmatpush3.bf16.msra.mxu0 %v1575_v44 }
 0x517   : > { %v1417_v47 = vpop.f32.mrb[4].mxu0 }
 0x518   : > { %v684_v48 = vadd.f32 %v1417_v47, %v1251_v45  ;;  %v678_v49 = vpop.f32.mrb[5].mxu0  ;;  %v889_v47 = vld [vmem:[#allocation2 + $0x1a8] sm:$0xff] }
 0x519   : > { %v679_v52 = vadd.f32 %v1251_v45, %v678_v49  ;;  %v888_v45 = vld [vmem:[#allocation2 + $0x1a0] sm:$0xff] }
 0x51a   : > { %v688_v54 = vmax.f32 %v684_v48, 0.0  ;;  %v1579_v46 = vpack.c.bf16 %v888_v45, %v887_v43  ;;  %v890_v48 = vld [vmem:[#allocation2 + $0x1b0] sm:$0xff]  ;;  %v1016_v43 = vld [vmem:[#allocation2 + $0x238] sm:$0xff]  ;;  %v1258_v45 = vld [vmem:[#allocation2 + $0x1e8] ss:$0 sm:$0xff] }
 0x51b   : > { %v687_v55 = vmax.f32 %v679_v52, 0.0  ;;  %v1583_v49 = vpack.c.bf16 %v890_v48, %v889_v47  ;;  %v1587_v52 = vpack.c.bf16 %v892_v51, %v891_v50  ;;  %v1615_v44 = vpack.c.bf16 %v1016_v43, %v1015_v42  ;;  %v1018_v47 = vld [vmem:[#allocation2 + $0x248] sm:$0xff] }
 0x51c   : > { %v692_v56 = vrot.slane %v688_v54, 4  ;;  %1580 = vmatprep.subr.bf16.mxu0 %v1579_v46 }
 0x51d   : > { %v691_v59 = vrot.slane %v687_v55, 4  ;;  %1582 = vmatpush3.bf16.msra.mxu0 %v1579_v46  ;;  %v1017_v46 = vld [vmem:[#allocation2 + $0x240] sm:$0xff] }
 0x51e   : > { %v701_v3 = vrot.slane %v692_v56, 2  ;;  %v712_v11 = vrot.slane %v692_v56, 4  ;;  %1584 = vmatprep.subr.bf16.mxu0 %v1583_v49 }
 0x51f   : > { %v693_v61 = vsel %vm555_vm10, %v691_v59, %v692_v56  ;;  %v696_v62 = vsel %vm555_vm10, 0.0, %v691_v59 }
 0x520   : > { %v698_v63 = vrot.slane %v696_v62, 2  ;;  %v699_v0 = vrot.slane %v693_v61, 2  ;;  %v709_v4 = vrot.slane %v696_v62, 4  ;;  %v710_v9 = vrot.slane %v693_v61, 4 }
 0x521   : > { %1586 = vmatpush3.bf16.msra.mxu0 %v1583_v49  ;;  %v1619_v49 = vpack.c.bf16 %v1018_v47, %v1017_v46 }
 0x522   : > { %v700_v2 = vsel %vm181_vm2, %v698_v63, %v699_v0  ;;  %v702_v6 = vsel %vm181_vm2, %v699_v0, %v701_v3  ;;  %v711_v10 = vsel %vm555_vm10, %v709_v4, %v710_v9  ;;  %v713_v12 = vsel %vm555_vm10, %v710_v9, %v712_v11  ;;  %1588 = vmatprep.subr.bf16.mxu0 %v1587_v52  ;;  %v893_v4 = vld [vmem:[#allocation2 + $0x1c8] sm:$0xff]  ;;  %v896_v11 = vld [vmem:[#allocation2 + $0x1e0] sm:$0xff] }
 0x523   : > { %703 = vrot.lane.b32.xlu1 %v700_v2, %s1794_s25 }
 0x525   : > { %1590 = vmatpush3.bf16.msra.mxu0 %v1587_v52 }
 0x527   : > { %705 = vrot.lane.b32.xlu1 %v702_v6, %s1794_s25  ;;  %v894_v6 = vld [vmem:[#allocation2 + $0x1d0] sm:$0xff] }
 0x528   : > { %v1591_v9 = vpack.c.bf16 %v894_v6, %v893_v4  ;;  %v1261_v4 = vld [vmem:[#allocation2 + $0x250] ss:$0 sm:$0xff] }
 0x52a   : > { %1592 = vmatprep.subr.bf16.mxu0 %v1591_v9 }
 0x52b   : > { %714 = vrot.lane.b32.xlu1 %v711_v10, %s1795_s26  ;;  %1594 = vmatpush3.bf16.msra.mxu0 %v1591_v9  ;;  %v895_v10 = vld [vmem:[#allocation2 + $0x1d8] sm:$0xff] }
 0x52f   : > { %716 = vrot.lane.b32.xlu1 %v713_v12, %s1795_s26 }
 0x595   : > { %v704_v13 = vpop.permute.xlu1 %703 }
 0x596   : > { %v720_v15 = vsel %vm322_vm6, %v696_v62, %v704_v13  ;;  %v1595_v13 = vpack.c.bf16 %v896_v11, %v895_v10 }
 0x598   : > { %1596 = vmatprep.subr.bf16.mxu0 %v1595_v13 }
 0x599   : > { %v706_v14 = vpop.permute.xlu1 %705  ;;  %1598 = vmatpush3.bf16.msra.mxu0 %v1595_v13 }
 0x59a   : > { %v721_v18 = vsel %vm322_vm6, %v693_v61, %v706_v14 }
 0x59d   : > { %v715_v16 = vpop.permute.xlu1 %714 }
 0x59e   : > { %v722_v17 = vsel %vm325_vm7, %v720_v15, %v715_v16 }
 0x59f   : > { %1442 = vmatprep.mubr.msk.f32.mxu1 %vm345_vm8, %v722_v17 }
 0x5a1   : > { %v717_v19 = vpop.permute.xlu1 %716 }
 0x5a2   : > { %v723_v20 = vsel %vm325_vm7, %v721_v18, %v717_v19 }
 0x5a3   : > { %1443 = vmatmul.mubr.msk.f32.vlgmr.msra.gmra.mrb[2].mxu1 %vm345_vm8, %v723_v20  ;;  %v1796_v20 = vmov 0.0  }
 0x676   : > { %v1444_v22 = vpop.f32.mrb[2].mxu1 }
 0x677   : > { %v1980_v23 = vadd.f32 %v1444_v22, %v1254_v21  ;;  %v813_v24 = vpop.f32.mrb[3].mxu1 }
 0x678   : > { %v1982_v25 = vadd.f32 %v1254_v21, %v813_v24  ;;  %v864_v21 = vrot.slane %v1796_v20, 4 }
 0x679   : > { %v823_v26 = vmax.f32 %v1980_v23, 0.0 }
 0x67a   : > { %v822_v27 = vmax.f32 %v1982_v25, 0.0 }
 0x67b   : > { %v827_v28 = vsel %vm322_vm6, %v823_v26, 0.0 }
 0x67c   : > { %v826_v29 = vsel %vm322_vm6, %v822_v27, 0.0 }
 0x67d   : > { %v828_v30 = vadd.f32 %v827_v28, %v826_v29 }
 0x67f   : > { %v829_v31 = vrot.slane %v828_v30, 4 }
 0x681   : > { %v830_v32 = vadd.f32 %v829_v31, %v828_v30  ;;  %v1007_v30 = vld [vmem:[#allocation2 + $0x1f0] sm:$0xff]  ;;  %v1008_v31 = vld [vmem:[#allocation2 + $0x1f8] sm:$0xff] }
 0x683   : > { %v831_v33 = vrot.slane %v830_v32, 2 }
 0x685   : > { %v832_v34 = vadd.f32 %v831_v33, %v830_v32  ;;  %v1009_v32 = vld [vmem:[#allocation2 + $0x200] sm:$0xff]  ;;  %v1599_v33 = vpack.c.bf16 %v1008_v31, %v1007_v30 }
 0x687   : > { %v833_v35 = vrot.slane %v832_v34, 1  ;;  %1600 = vmatprep.subr.bf16.mxu1 %v1599_v33 }
 0x688   : > { %1602 = vmatpush3.bf16.msra.mxu1 %v1599_v33 }
 0x689   : > { %v834_v36 = vadd.f32 %v833_v35, %v832_v34  ;;  %v1010_v34 = vld [vmem:[#allocation2 + $0x208] sm:$0xff] }
 0x68a   : > { %v1603_v35 = vpack.c.bf16 %v1010_v34, %v1009_v32 }
 0x68b   : > { %v835_v38 = vmul.f32 0.0625, %v834_v36  ;;  %v1011_v36 = vld [vmem:[#allocation2 + $0x210] sm:$0xff] }
 0x68c   : > { %1604 = vmatprep.subr.bf16.mxu1 %v1603_v35 }
 0x68d   : > { %v836_v39 = vmul.f32 %v835_v38, %v824_v37  ;;  %v1012_v37 = vld [vmem:[#allocation2 + $0x218] sm:$0xff]  ;;  %1606 = vmatpush3.bf16.msra.mxu1 %v1603_v35 }
 0x68e   : > { %v1607_v38 = vpack.c.bf16 %v1012_v37, %v1011_v36 }
 0x68f   : > { %v837_v40 = vsel %vm528_vm9, %v836_v39, 0.0  ;;  %v1013_v39 = vld [vmem:[#allocation2 + $0x220] sm:$0xff] }
 0x690   : > { %838 = vadd.xlane.f32.xlu0 %v837_v40  ;;  %1608 = vmatprep.subr.bf16.mxu1 %v1607_v38  ;;  %v1014_v40 = vld [vmem:[#allocation2 + $0x228] sm:$0xff] }
 0x691   : > { %1610 = vmatpush3.bf16.msra.mxu1 %v1607_v38  ;;  %v1611_v41 = vpack.c.bf16 %v1014_v40, %v1013_v39 }
 0x693   : > { %1612 = vmatprep.subr.bf16.mxu1 %v1611_v41 }
 0x695   : > { %1614 = vmatpush3.bf16.msra.mxu1 %v1611_v41 }
 0x696   : > { %1616 = vmatprep.subr.bf16.mxu1 %v1615_v44 }
 0x699   : > { %1618 = vmatpush3.bf16.msra.mxu1 %v1615_v44 }
 0x69a   : > { %1620 = vmatprep.subr.bf16.mxu1 %v1619_v49 }
 0x69d   : > { %1622 = vmatpush3.bf16.msra.mxu1 %v1619_v49 }
 0x71d   : > { %v839_v54 = vpop.xlane.xlu0 %838 }
 0x71e   : > { %v840_v55 = vmax.f32 %v839_v54, 0.0 }
 0x720   : > { %v841_v56 = vmul.f32 %v840_v55, %v825_v53 }
 0x722   : > { %v842_v57 = vsel %vm528_vm9, %v841_v56, 0.0 }
 0x723   : > { %v843_v58 = vrot.slane %v842_v57, 4 }
 0x725   : > { %v844_v59 = vadd.f32 %v843_v58, %v842_v57 }
 0x727   : > { %v845_v60 = vrot.slane %v844_v59, 2 }
 0x729   : > { %v846_v61 = vadd.f32 %v845_v60, %v844_v59 }
 0x72b   : > { %v847_v62 = vrot.slane %v846_v61, 1 }
 0x72d   : > { %v848_v63 = vadd.f32 %v847_v62, %v846_v61 }
 0x72f   : > { %v1257_v0 = vmul.f32 -1.442695, %v848_v63 }
 0x731   : > { %1685 = vpow2.f32 %v1257_v0 }
 0x73b   : > { %v1686_v2 = vpop.eup %1685 }
 0x73c   : > { %v852_v3 = vadd.f32 1.0, %v1686_v2 }
 0x73e   : > { %1687 = vrcp.f32 %v852_v3 }
 0x748   : > { %v1688_v12 = vpop.eup %1687 }
 0x749   : > { %v855_v14 = vmul.f32 %v1688_v12, %v822_v27  ;;  %v856_v15 = vmul.f32 %v1688_v12, %v823_v26 }
 0x74b   : > { %v857_v16 = vadd.f32 %v855_v14, %v551_v8  ;;  %v858_v17 = vadd.f32 %v856_v15, %v552_v7 }
 0x74d   : > { %v1994_v18 = vmax.f32 %v857_v16, 0.0  ;;  %v1996_v19 = vmax.f32 %v858_v17, 0.0 }
 0x74f   : > { %v865_v22 = vrot.slane %v1994_v18, 4  ;;  %v867_v23 = vrot.slane %v1996_v19, 4 }
 0x751   : > { %v868_v24 = vsel %vm555_vm10, %v865_v22, %v867_v23  ;;  %v866_v25 = vsel %vm555_vm10, %v864_v21, %v865_v22 }
 0x752   : > { %871 = vrot.lane.b32.xlu0 %v868_v24, %s1794_s25  ;;  %869 = vrot.lane.b32.xlu1 %v866_v25, %s1794_s25  ;;  %v1107_v25 = vld [vmem:[#allocation2 + $0x258] sm:$0x3] }
 0x756   : > { %875 = vrot.lane.b32.xlu1 %v1994_v18, %s1795_s26 }
 0x75a   : > { %877 = vrot.lane.b32.xlu1 %v1996_v19, %s1795_s26 }
 0x7c4   : > { %v870_v1 = vpop.permute.xlu1 %869  ;;  %v872_v8 = vpop.permute.xlu0 %871 }
 0x7c5   : > { %v881_v5 = vsel %vm322_vm6, 0.0, %v870_v1  ;;  %v882_v27 = vsel %vm322_vm6, %v1994_v18, %v872_v8  ;;  %v1108_v8 = vld [vmem:[#allocation2 + $0x260] sm:$0x3] }
 0x7c8   : > { %v876_v7 = vpop.permute.xlu1 %875 }
 0x7c9   : > { %v883_v26 = vsel %vm325_vm7, %v881_v5, %v876_v7 }
 0x7ca   : > { %1469 = vmatprep.mubr.msk.f32.mxu0 %vm345_vm8, %v883_v26 }
 0x7cc   : > { %v878_v28 = vpop.permute.xlu1 %877 }
 0x7cd   : > { %v884_v29 = vsel %vm325_vm7, %v882_v27, %v878_v28 }
 0x7ce   : > { %1470 = vmatmul.mubr.msk.f32.vlgmr.msra.gmra.mrb[6].mxu0 %vm345_vm8, %v884_v29 }
 0x8a1   : > { %v1471_v48 = vpop.f32.mrb[6].mxu0 }
 0x8a2   : > { %v980_v50 = vadd.f32 %v1471_v48, %v1258_v45  ;;  %v974_v51 = vpop.f32.mrb[7].mxu0 }
 0x8a3   : > { %v975_v52 = vadd.f32 %v1258_v45, %v974_v51 }
 0x8a4   : > { %v984_v54 = vmax.f32 %v980_v50, 0.0 }
 0x8a5   : > { %v983_v53 = vmax.f32 %v975_v52, 0.0 }
 0x8a6   : > { %v989_v57 = vrot.slane %v984_v54, 4 }
 0x8a7   : > { %v987_v55 = vrot.slane %v983_v53, 4  ;;  %997 = vrot.lane.b32.xlu1 %v983_v53, %s1795_s26 }
 0x8a9   : > { %v988_v56 = vsel %vm555_vm10, %v864_v21, %v987_v55  ;;  %v990_v58 = vsel %vm555_vm10, %v987_v55, %v989_v57 }
 0x8ab   : > { %991 = vrot.lane.b32.xlu1 %v988_v56, %s1794_s25 }
 0x8af   : > { %993 = vrot.lane.b32.xlu1 %v990_v58, %s1794_s25 }
 0x8b3   : > { %999 = vrot.lane.b32.xlu1 %v984_v54, %s1795_s26 }
 0x919   : > { %v998_v59 = vpop.permute.xlu1 %997 }
 0x91d   : > { %v992_v60 = vpop.permute.xlu1 %991 }
 0x91e   : > { %v1003_v61 = vsel %vm322_vm6, 0.0, %v992_v60 }
 0x91f   : > { %v1005_v62 = vsel %vm325_vm7, %v1003_v61, %v998_v59 }
 0x920   : > { %1496 = vmatprep.mubr.msk.f32.mxu1 %vm345_vm8, %v1005_v62 }
 0x921   : > { %v994_v63 = vpop.permute.xlu1 %993 }
 0x922   : > { %v1004_v0 = vsel %vm322_vm6, %v983_v53, %v994_v63 }
 0x925   : > { %v1000_v2 = vpop.permute.xlu1 %999 }
 0x926   : > { %v1006_v3 = vsel %vm325_vm7, %v1004_v0, %v1000_v2 }
 0x927   : > { %1497 = vmatmul.mubr.msk.f32.vlgmr.msra.gmra.mrb[4].mxu1 %vm345_vm8, %v1006_v3 }
 0x9fa   : > { %v1498_v6 = vpop.f32.mrb[4].mxu1 }
 0x9fb   : > { %v1102_v9 = vadd.f32 %v1498_v6, %v1261_v4  ;;  %v1096_v10 = vpop.f32.mrb[5].mxu1 }
 0x9fc   : > { %v1097_v11 = vadd.f32 %v1261_v4, %v1096_v10 }
 0x9fd   : > { %v1106_v12 = vmax.f32 %v1102_v9, 0.0 }
 0x9fe   : > { %v1105_v13 = vmax.f32 %v1097_v11, 0.0 }
 0x9ff   : > { %v1110_v14 = vsel %vm322_vm6, %v1106_v12, 0.0 }
 0xa00   : > { %v1109_v15 = vsel %vm322_vm6, %v1105_v13, 0.0 }
 0xa01   : > { %v1111_v16 = vadd.f32 %v1110_v14, %v1109_v15 }
 0xa03   : > { %v1112_v17 = vrot.slane %v1111_v16, 4 }
 0xa05   : > { %v1113_v20 = vadd.f32 %v1112_v17, %v1111_v16 }
 0xa07   : > { %v1114_v21 = vrot.slane %v1113_v20, 2 }
 0xa09   : > { %v1115_v22 = vadd.f32 %v1114_v21, %v1113_v20 }
 0xa0b   : > { %v1116_v23 = vrot.slane %v1115_v22, 1 }
 0xa0d   : > { %v1117_v24 = vadd.f32 %v1116_v23, %v1115_v22 }
 0xa0f   : > { %v1118_v1 = vmul.f32 0.0625, %v1117_v24 }
 0xa11   : > { %v1119_v5 = vmul.f32 %v1118_v1, %v1107_v25 }
 0xa13   : > { %v1120_v7 = vsel %vm528_vm9, %v1119_v5, 0.0 }
 0xa14   : > { %1121 = vadd.xlane.f32.xlu0 %v1120_v7 }
 0xaa1   : > { %v1122_v26 = vpop.xlane.xlu0 %1121 }
 0xaa2   : > { %v1123_v27 = vmax.f32 %v1122_v26, 0.0 }
 0xaa4   : > { %v1124_v28 = vmul.f32 %v1123_v27, %v1108_v8 }
 0xaa6   : > { %v1125_v29 = vsel %vm528_vm9, %v1124_v28, 0.0 }
 0xaa7   : > { %v1126_v30 = vrot.slane %v1125_v29, 4 }
 0xaa9   : > { %v1127_v31 = vadd.f32 %v1126_v30, %v1125_v29 }
 0xaab   : > { %v1128_v32 = vrot.slane %v1127_v31, 2 }
 0xaad   : > { %v1129_v33 = vadd.f32 %v1128_v32, %v1127_v31 }
 0xaaf   : > { %v1130_v34 = vrot.slane %v1129_v33, 1 }
 0xab1   : > { %v1131_v35 = vadd.f32 %v1130_v34, %v1129_v33 }
 0xab3   : > { %v1264_v36 = vmul.f32 -1.442695, %v1131_v35 }
 0xab5   : > { %1689 = vpow2.f32 %v1264_v36 }
 0xabf   : > { %v1690_v37 = vpop.eup %1689 }
 0xac0   : > { %v1135_v38 = vadd.f32 1.0, %v1690_v37 }
 0xac2   : > { %1691 = vrcp.f32 %v1135_v38 }
 0xacc   : > { %v1692_v39 = vpop.eup %1691 }
 0xacd   : > { %v1138_v40 = vmul.f32 %v1692_v39, %v1105_v13  ;;  %v1139_v41 = vmul.f32 %v1692_v39, %v1106_v12 }
 0xacf   : > { %v1140_v42 = vadd.f32 %v1138_v40, %v1994_v18  ;;  %v1141_v43 = vadd.f32 %v1139_v41, %v1996_v19 }
 0xad1   : > { %1142 = vst.msk [vmem:[%s151_s30] sm:$0xff] %vm322_vm6, %v1140_v42  ;;  %1143 = vst.msk [vmem:[%s151_s30 + $0x8] sm:$0xff] %vm322_vm6, %v1141_v43 }
 0xad2   : > { %1734 = shalt.err (!%p1731_p7)
}
 0xad3   : > { %s1735_s17 = scalar_lea.hbm %s2036_s6, 256  ;;  %s1739_s23 = scalar_lea.hbm %s2088_s2, 512 }
 0xad4   : > { %p1736_p8 = scmp.ne.s32.totalorder %s2036_s6, %s1735_s17  ;;  %p1740_p1 = scmp.lt.u32.totalorder %s2036_s6, %s2088_s2 }
 0xad5   : > { %p1741_p0 = scmp.lt.u32.totalorder %s1739_s23, %s1735_s17  ;;  %p1743_p6 = scmp.lt.u32.totalorder %s1735_s17, %s2036_s6 }
 0xad6   : > { %p1737_p11 = pnand %p1736_p8, %p2099_p9 }
 0xad7   : > { %p1742_p5 = por %p1741_p0, %p1740_p1 }
 0xad8   : > { %p1738_p13 = pneg %p1737_p11 }
 0xad9   : > { %p1744_p10 = por %p1743_p6, %p1742_p5 }
 0xadb   : > { %p1745_p12 = pnand %p1744_p10, %p1738_p13 }
 0xadd   : > { %1748 = shalt.err (!%p1745_p12)
}
 0xade   : > { %s1798_s27 = smov 128  }
 0xadf   : > { %1627 = dma.vmem_to_hbm [thread:$0]  (%p2099_p9), %s2040_s3, 256, %s2036_s6, %s2044_s13, %s1798_s27, %s1798_s27, %s1792_s21  }
 0xae0 PF: > { %p1639_p2 = scmp.ge.s32.totalorder %s1787_s12, 2  ;;  %s1173_s28 = sand.u32 1, %s1775_s9  }
 0xae1   : > { %p2100_p3 = scmp.ne.s32.totalorder %s2093_s20, 0  ;;  %s1174_s29 = scalar_lea.sflag [#allocation4], %s1173_s28 }
 0xae3   : > { %p1634_p4 = pnand %p1639_p2, %p2100_p3 }
 0xae5   : > { %1770 = dma.done.wait (!%p1634_p4), %s1174_s29, 256  }
 0xae6   : > { %1772 = vsyncadd (!%p1634_p4), %s1174_s29, 4294967040  ;;  %p13_p7 = scmp.ge.s32.totalorder %s1839_s15, 4   ;;  %s2101_s9 = smov %s1779_s10 }
 0xae7   : > { %s2102_s10 = smov %s1783_s11  ;;  %s2103_s11 = smov %s1850_s18 }
 0xae8   : > { %s2104_s12 = smov %s1839_s15  ;;  %15 = sbr.rel (!%p13_p7) target bundleno = 4 (0x4), region = 68 }
 0xaef   :  { %1179 = vsyncpa [#allocation3], 1 }
 0xaf0   :  { %1181 = vsyncpa [#allocation3 + $0x1], 1 }
 0xaf1   :  { %1182 = vsyncpa [#allocation4], 1 }
 0xaf2   :  { %1184 = vsyncpa [#allocation4 + $0x1], 1 }

</bundles_post_ra>
